<compile_context>
chip_gen: v7x
topology: tpu7x:2x2x1
jax: 0.10.0
libtpu: 0.0.40
codegen_flags: <defaults>
</compile_context>

<pallas_src>
import math
from functools import partial

import jax
import jax.numpy as jnp
from jax.experimental import pallas as pl
from jax.experimental.pallas import tpu as pltpu

_LOG2_E = 1.4426950408889634
_VMEM_LIMIT_BYTES = 48 * 1024 * 1024


def _pick_tile(dim, cap):
    """Largest power-of-two-ish tile <= cap that divides dim (fallback: dim)."""
    t = cap
    while t >= 8:
        if dim % t == 0:
            return t
        t //= 2
    return dim


# ----------------------------------------------------------------------------
# Kernel 1: fused QKV projection + RoPE + head-major layout
#   x (B, S, H) @ [wq_t | wk_t | wv_t]  ->  q (B, NH, S, D) (RoPE'd, scaled),
#                                           k (B, NKV, S, D) (RoPE'd),
#                                           v (B, NKV, S, D)
# ----------------------------------------------------------------------------
def _qkv_rope_kernel(x_ref, wq_ref, wk_ref, wv_ref, cos_ref, sin_ref,
                     q_ref, k_ref, v_ref, accq, acck, accv,
                     *, num_heads, num_kv_heads, head_dim, q_scale):
    kk = pl.program_id(2)

    @pl.when(kk == 0)
    def _init():
        accq[...] = jnp.zeros_like(accq)
        acck[...] = jnp.zeros_like(acck)
        accv[...] = jnp.zeros_like(accv)

    x = x_ref[0]                                     # (tm, tk)
    accq[...] += jnp.dot(x, wq_ref[...], preferred_element_type=jnp.float32)
    acck[...] += jnp.dot(x, wk_ref[...], preferred_element_type=jnp.float32)
    accv[...] += jnp.dot(x, wv_ref[...], preferred_element_type=jnp.float32)

    @pl.when(kk == pl.num_programs(2) - 1)
    def _finalize():
        half = head_dim // 2
        cos = cos_ref[...]                           # (tm, D) f32
        sin = sin_ref[...]                           # sign-folded sin, f32

        def _rope(h2d):                              # (tm, D) -> (tm, D)
            # rotate_half folded: concat(x2, x1) * [-sin_h, +sin_h]
            rolled = jnp.concatenate([h2d[:, half:], h2d[:, :half]], axis=-1)
            return h2d * cos + rolled * sin
            # TODO(synk): when head_dim is a multiple of 128 this concat can
            # become a pltpu.roll (XLU slot) instead of a lane shuffle.

        for h in range(num_heads):
            qh = accq[:, h * head_dim:(h + 1) * head_dim]
            q_ref[0, h] = (_rope(qh) * q_scale).astype(q_ref.dtype)

        for h in range(num_kv_heads):
            kh = acck[:, h * head_dim:(h + 1) * head_dim]
            k_ref[0, h] = _rope(kh).astype(k_ref.dtype)
            v_ref[0, h] = accv[:, h * head_dim:(h + 1) * head_dim].astype(
                v_ref.dtype)


def qkv_rope_projection(x, wq_t, wk_t, wv_t, cos, sin_folded, *,
                        num_heads, num_kv_heads, tm_cap=256, tk_cap=512):
    B, S, H = x.shape
    head_dim = H // num_heads
    q_out = num_heads * head_dim
    kv_out = num_kv_heads * head_dim
    tm = _pick_tile(S, tm_cap)
    tk = _pick_tile(H, tk_cap)
    grid = (B, S // tm, H // tk)
    q_scale = _LOG2_E / math.sqrt(head_dim)          # softmax scale + log2(e)

    itemsize = jnp.dtype(x.dtype).itemsize
    cost = pl.CostEstimate(
        flops=2 * B * S * H * (q_out + 2 * kv_out),
        transcendentals=0,
        bytes_accessed=itemsize * (B * S * H + H * (q_out + 2 * kv_out)
                                   + B * S * (q_out + 2 * kv_out)))

    kernel = partial(_qkv_rope_kernel, num_heads=num_heads,
                     num_kv_heads=num_kv_heads, head_dim=head_dim,
                     q_scale=q_scale)

    return pl.pallas_call(
        kernel,
        out_shape=(
            jax.ShapeDtypeStruct((B, num_heads, S, head_dim), x.dtype),
            jax.ShapeDtypeStruct((B, num_kv_heads, S, head_dim), x.dtype),
            jax.ShapeDtypeStruct((B, num_kv_heads, S, head_dim), x.dtype),
        ),
        grid_spec=pltpu.PrefetchScalarGridSpec(
            num_scalar_prefetch=0,
            grid=grid,
            in_specs=[
                pl.BlockSpec((1, tm, tk), lambda b, si, kk: (b, si, kk)),
                pl.BlockSpec((tk, q_out), lambda b, si, kk: (kk, 0)),
                pl.BlockSpec((tk, kv_out), lambda b, si, kk: (kk, 0)),
                pl.BlockSpec((tk, kv_out), lambda b, si, kk: (kk, 0)),
                pl.BlockSpec((tm, head_dim), lambda b, si, kk: (si, 0)),
                pl.BlockSpec((tm, head_dim), lambda b, si, kk: (si, 0)),
            ],
            out_specs=[
                pl.BlockSpec((1, num_heads, tm, head_dim),
                             lambda b, si, kk: (b, 0, si, 0)),
                pl.BlockSpec((1, num_kv_heads, tm, head_dim),
                             lambda b, si, kk: (b, 0, si, 0)),
                pl.BlockSpec((1, num_kv_heads, tm, head_dim),
                             lambda b, si, kk: (b, 0, si, 0)),
            ],
            scratch_shapes=[
                pltpu.VMEM((tm, q_out), jnp.float32),
                pltpu.VMEM((tm, kv_out), jnp.float32),
                pltpu.VMEM((tm, kv_out), jnp.float32),
            ],
        ),
        compiler_params=pltpu.CompilerParams(
            dimension_semantics=("parallel", "parallel", "arbitrary"),
            vmem_limit_bytes=_VMEM_LIMIT_BYTES),
        cost_estimate=cost,
    )(x, wq_t, wk_t, wv_t, cos, sin_folded)


# ----------------------------------------------------------------------------
# Kernel 2: causal flash attention, all heads per step (GQA-aware)
#   grid (B, S//tq, S//tk); K/V index maps clamped to the causal boundary so
#   dead future tiles cost no DMA; only diagonal tiles apply the mask.
# ----------------------------------------------------------------------------
def _flash_attn_kernel(q_ref, k_ref, v_ref, o_ref, m_scr, l_scr, acc_scr,
                       *, num_kv_heads, groups, head_dim, block_q, block_k):
    qi = pl.program_id(1)
    ki = pl.program_id(2)
    q_start = qi * block_q
    k_start = ki * block_k
    n_rows = groups * block_q                        # tall GQA lhs rows

    @pl.when(ki == 0)
    def _init():
        m_scr[...] = jnp.full(m_scr.shape, -jnp.inf, jnp.float32)
        l_scr[...] = jnp.zeros(l_scr.shape, jnp.float32)
        acc_scr[...] = jnp.zeros(acc_scr.shape, jnp.float32)

    is_live = k_start < q_start + block_q            # tile has unmasked entries
    straddles = k_start + block_k - 1 > q_start      # tile has masked entries

    def _process(masked):
        if masked:
            q_pos = q_start + jax.lax.broadcasted_iota(
                jnp.int32, (groups, block_q, 1), 1).reshape(n_rows, 1)
            k_pos = k_start + jax.lax.broadcasted_iota(
                jnp.int32, (1, block_k), 1)
            keep = q_pos >= k_pos                    # (n_rows, tk)

        for kv in range(num_kv_heads):
            # q rows for this kv group: heads kv*G .. kv*G+G-1 stacked.
            q = q_ref[0, kv * groups:(kv + 1) * groups].reshape(n_rows, head_dim)
            k = k_ref[0, kv]                         # (tk, D), already RoPE'd
            v = v_ref[0, kv]                         # (tk, D)

            # scale (incl. log2 e) already folded into q by the projection.
            s = jax.lax.dot_general(
                q, k, dimension_numbers=(((1,), (1,)), ((), ())),
                preferred_element_type=jnp.float32)  # (n_rows, tk)
            if masked:
                s = jnp.where(keep, s, -1e30)

            m_prev = m_scr[kv]
            m_new = jnp.maximum(m_prev, jnp.max(s, axis=-1, keepdims=True))
            alpha = jnp.exp2(m_prev - m_new)
            p = jnp.exp2(s - m_new)
            l_scr[kv] = alpha * l_scr[kv] + jnp.sum(p, axis=-1, keepdims=True)
            acc_scr[kv] = alpha * acc_scr[kv] + jnp.dot(
                p.astype(v.dtype), v, preferred_element_type=jnp.float32)
            m_scr[kv] = m_new

    @pl.when(jnp.logical_and(is_live, straddles))
    def _diag_tiles():
        _process(True)

    @pl.when(jnp.logical_and(is_live, jnp.logical_not(straddles)))
    def _full_tiles():
        _process(False)

    @pl.when(ki == pl.num_programs(2) - 1)
    def _finalize():
        for kv in range(num_kv_heads):
            o_kv = acc_scr[kv] * pl.reciprocal(l_scr[kv], approx=False)
            for g in range(groups):
                h = kv * groups + g
                o_ref[0, :, h * head_dim:(h + 1) * head_dim] = (
                    o_kv[g * block_q:(g + 1) * block_q, :].astype(o_ref.dtype))


def flash_attention(q, k, v, *, block_q_cap=256, block_k_cap=256):
    """q: (B, NH, S, D) RoPE'd & scaled; k: (B, NKV, S, D) RoPE'd; v alike."""
    B, NH, S, D = q.shape
    NKV = k.shape[1]
    groups = NH // NKV
    H = NH * D
    tq = _pick_tile(S, block_q_cap)
    tk = _pick_tile(S, block_k_cap)
    grid = (B, S // tq, S // tk)

    itemsize = jnp.dtype(q.dtype).itemsize
    kv_passes = max(1, (S // tq + 1) // 2)
    cost = pl.CostEstimate(
        flops=2 * B * NH * S * S * D,                # 2 matmuls, ~causal half
        transcendentals=B * NH * S * S // 2,
        bytes_accessed=itemsize * (B * NH * S * D + B * S * H
                                   + 2 * B * NKV * S * D * kv_passes))

    kernel = partial(_flash_attn_kernel, num_kv_heads=NKV, groups=groups,
                     head_dim=D, block_q=tq, block_k=tk)

    def kv_index_map(b, qi, ki):
        # Clamp to the last causally-valid k block: dead steps re-use the
        # resident block, so no DMA is issued for them.
        last_valid = (qi * tq + tq - 1) // tk
        return (b, 0, jnp.minimum(ki, last_valid), 0)

    # TODO(synk): on v7x (3.2 TB/s HBM) consider pipeline_mode=pl.Buffered(3)
    # on the k/v specs if the profile shows DMA-exposed steps.
    return pl.pallas_call(
        kernel,
        out_shape=jax.ShapeDtypeStruct((B, S, H), q.dtype),
        grid_spec=pltpu.PrefetchScalarGridSpec(
            num_scalar_prefetch=0,
            grid=grid,
            in_specs=[
                pl.BlockSpec((1, NH, tq, D), lambda b, qi, ki: (b, 0, qi, 0)),
                pl.BlockSpec((1, NKV, tk, D), kv_index_map),
                pl.BlockSpec((1, NKV, tk, D), kv_index_map),
            ],
            out_specs=pl.BlockSpec((1, tq, H), lambda b, qi, ki: (b, qi, 0)),
            scratch_shapes=[
                pltpu.VMEM((NKV, groups * tq, 1), jnp.float32),   # running max
                pltpu.VMEM((NKV, groups * tq, 1), jnp.float32),   # running sum
                pltpu.VMEM((NKV, groups * tq, D), jnp.float32),   # accumulator
            ],
        ),
        compiler_params=pltpu.CompilerParams(
            dimension_semantics=("parallel", "parallel", "arbitrary"),
            vmem_limit_bytes=_VMEM_LIMIT_BYTES),
        cost_estimate=cost,
    )(q, k, v)


# ----------------------------------------------------------------------------
# Kernel 3: plain tiled matmul for o_proj (weight pre-transposed, NN form)
# ----------------------------------------------------------------------------
def _matmul_kernel(x_ref, w_ref, o_ref, acc_ref):
    @pl.when(pl.program_id(2) == 0)
    def _init():
        acc_ref[...] = jnp.zeros_like(acc_ref)

    acc_ref[...] += jnp.dot(x_ref[...], w_ref[...],
                            preferred_element_type=jnp.float32)

    @pl.when(pl.program_id(2) == pl.num_programs(2) - 1)
    def _finalize():
        o_ref[...] = acc_ref[...].astype(o_ref.dtype)


def linear_no_bias(x2d, w_t, *, tm_cap=256, tn_cap=256, tk_cap=512):
    """x2d: (M, K); w_t: (K, N) (pre-transposed nn.Linear weight) -> (M, N)."""
    M, K = x2d.shape
    K2, N = w_t.shape
    assert K == K2
    tm = _pick_tile(M, tm_cap)
    tn = _pick_tile(N, tn_cap)
    tk = _pick_tile(K, tk_cap)
    grid = (M // tm, N // tn, K // tk)

    itemsize = jnp.dtype(x2d.dtype).itemsize
    cost = pl.CostEstimate(
        flops=2 * M * N * K, transcendentals=0,
        bytes_accessed=itemsize * (M * K + K * N + M * N))

    return pl.pallas_call(
        _matmul_kernel,
        out_shape=jax.ShapeDtypeStruct((M, N), x2d.dtype),
        grid_spec=pltpu.PrefetchScalarGridSpec(
            num_scalar_prefetch=0,
            grid=grid,
            in_specs=[
                pl.BlockSpec((tm, tk), lambda i, j, kk: (i, kk)),
                pl.BlockSpec((tk, tn), lambda i, j, kk: (kk, j)),
            ],
            out_specs=pl.BlockSpec((tm, tn), lambda i, j, kk: (i, j)),
            scratch_shapes=[pltpu.VMEM((tm, tn), jnp.float32)],
        ),
        compiler_params=pltpu.CompilerParams(
            dimension_semantics=("parallel", "parallel", "arbitrary"),
            vmem_limit_bytes=_VMEM_LIMIT_BYTES),
        cost_estimate=cost,
    )(x2d, w_t)


# ----------------------------------------------------------------------------
# One-time "model load" prep: transposed weights + f32 RoPE tables
# ----------------------------------------------------------------------------
def make_rope_tables(seq_len, head_dim, rope_theta=10000.0):
    inv_freq = 1.0 / (rope_theta ** (jnp.arange(0, head_dim, 2,
                                                dtype=jnp.float32) / head_dim))
    t = jnp.arange(seq_len, dtype=jnp.float32)
    freqs = jnp.einsum("i,j->ij", t, inv_freq)        # (S, D/2)
    emb = jnp.concatenate([freqs, freqs], axis=-1)    # (S, D)
    cos = jnp.cos(emb)
    sign = jnp.concatenate([-jnp.ones((head_dim // 2,), jnp.float32),
                            jnp.ones((head_dim // 2,), jnp.float32)])
    sin_folded = jnp.sin(emb) * sign                  # rotate_half sign folded
    return cos, sin_folded


def prepare_attention_params(params, *, seq_len, num_heads, num_key_value_heads,
                             rope_theta=10000.0):
    head_dim = params["q_proj"].shape[0] // num_heads
    cos, sin_folded = make_rope_tables(seq_len, head_dim, rope_theta)
    return {
        "wq_t": jnp.asarray(params["q_proj"]).T,      # (H, NH*D)
        "wk_t": jnp.asarray(params["k_proj"]).T,      # (H, NKV*D)
        "wv_t": jnp.asarray(params["v_proj"]).T,      # (H, NKV*D)
        "wo_t": jnp.asarray(params["o_proj"]).T,      # (NH*D, H)
        "cos": cos,                                   # f32 (S, D)
        "sin_folded": sin_folded,                     # f32 (S, D)
    }


# ----------------------------------------------------------------------------
# Full LlamaAttention forward
# ----------------------------------------------------------------------------
def llama_attention_forward(hidden_states, prep, *, num_heads,
                            num_key_value_heads):
    B, S, H = hidden_states.shape
    q, k, v = qkv_rope_projection(
        hidden_states, prep["wq_t"], prep["wk_t"], prep["wv_t"],
        prep["cos"][:S], prep["sin_folded"][:S],
        num_heads=num_heads, num_kv_heads=num_key_value_heads)
    attn = flash_attention(q, k, v)                   # (B, S, H), token-major
    out = linear_no_bias(attn.reshape(B * S, H), prep["wo_t"])
    return out.reshape(B, S, H)
    # TODO(synk): attention_dropout (p=0 / eval mode), past_key_value cache,
    # user-supplied padding attention_mask, rope_scaling (linear / dynamic
    # NTK) and the pretraining_tp>1 split path are not modeled (defaults).


# ----------------------------------------------------------------------------
# Pure-JAX reference (mirrors the PyTorch forward) for a sanity check
# ----------------------------------------------------------------------------
def reference_forward(hidden_states, params, *, num_heads,
                      num_key_value_heads, rope_theta=10000.0):
    B, S, H = hidden_states.shape
    D = H // num_heads
    x2d = hidden_states.reshape(B * S, H)
    q = (x2d @ params["q_proj"].T).reshape(B, S, num_heads, D).transpose(0, 2, 1, 3)
    k = (x2d @ params["k_proj"].T).reshape(B, S, num_key_value_heads, D).transpose(0, 2, 1, 3)
    v = (x2d @ params["v_proj"].T).reshape(B, S, num_key_value_heads, D).transpose(0, 2, 1, 3)

    inv_freq = 1.0 / (rope_theta ** (jnp.arange(0, D, 2, dtype=jnp.float32) / D))
    freqs = jnp.einsum("i,j->ij", jnp.arange(S, dtype=jnp.float32), inv_freq)
    emb = jnp.concatenate([freqs, freqs], axis=-1)
    cos, sin = jnp.cos(emb), jnp.sin(emb)

    def rope(x):
        x1, x2 = x[..., :D // 2], x[..., D // 2:]
        rot = jnp.concatenate([-x2, x1], axis=-1)
        return x * cos[None, None] + rot * sin[None, None]

    q, k = rope(q), rope(k)
    rep = num_heads // num_key_value_heads
    k = jnp.repeat(k, rep, axis=1)
    v = jnp.repeat(v, rep, axis=1)

    scores = jnp.einsum("bhqd,bhkd->bhqk", q, k) / math.sqrt(D)
    neg = jnp.finfo(jnp.float32).min
    causal = jnp.where(jnp.arange(S)[:, None] >= jnp.arange(S)[None, :], 0.0, neg)
    scores = scores + causal[None, None]
    p = jax.nn.softmax(scores.astype(jnp.float32), axis=-1)
    attn = jnp.einsum("bhqk,bhkd->bhqd", p, v)
    attn = attn.transpose(0, 2, 1, 3).reshape(B * S, H)
    return (attn @ params["o_proj"].T).reshape(B, S, H)


if __name__ == "__main__":
    # Small, module-consistent config.
    batch, seq = 2, 8
    hidden_size = 32
    num_heads = 4
    num_key_value_heads = 2
    head_dim = hidden_size // num_heads  # 8

    key = jax.random.PRNGKey(0)
    k0, k1, k2, k3, k4 = jax.random.split(key, 5)
    scale = 0.05
    params = {
        "q_proj": scale * jax.random.normal(
            k0, (num_heads * head_dim, hidden_size), jnp.float32),
        "k_proj": scale * jax.random.normal(
            k1, (num_key_value_heads * head_dim, hidden_size), jnp.float32),
        "v_proj": scale * jax.random.normal(
            k2, (num_key_value_heads * head_dim, hidden_size), jnp.float32),
        "o_proj": scale * jax.random.normal(
            k3, (hidden_size, num_heads * head_dim), jnp.float32),
    }
    hidden_states = jax.random.normal(k4, (batch, seq, hidden_size), jnp.float32)

    prep = prepare_attention_params(
        params, seq_len=seq, num_heads=num_heads,
        num_key_value_heads=num_key_value_heads, rope_theta=10000.0)

    out = llama_attention_forward(
        hidden_states, prep,
        num_heads=num_heads, num_key_value_heads=num_key_value_heads)
    out = jax.block_until_ready(out)

    ref = reference_forward(
        hidden_states, params,
        num_heads=num_heads, num_key_value_heads=num_key_value_heads)
    assert out.shape == (batch, seq, hidden_size)
    assert jnp.allclose(out, ref, rtol=2e-3, atol=2e-4), "mismatch vs reference"

    print("KERNEL_OK")
</pallas_src>

<mosaic_0001>
module attributes {stable_mosaic.version = 11 : i64} {
  func.func @_qkv_rope_kernel(%arg0: i32, %arg1: i32, %arg2: i32, %arg3: memref<1x8x32xf32, #tpu.memory_space<vmem>>, %arg4: memref<32x32xf32, #tpu.memory_space<vmem>>, %arg5: memref<32x16xf32, #tpu.memory_space<vmem>>, %arg6: memref<32x16xf32, #tpu.memory_space<vmem>>, %arg7: memref<8x8xf32, #tpu.memory_space<vmem>>, %arg8: memref<8x8xf32, #tpu.memory_space<vmem>>, %arg9: memref<1x4x8x8xf32, #tpu.memory_space<vmem>>, %arg10: memref<1x2x8x8xf32, #tpu.memory_space<vmem>>, %arg11: memref<1x2x8x8xf32, #tpu.memory_space<vmem>>, %arg12: memref<8x32xf32, #tpu.memory_space<vmem>>, %arg13: memref<8x16xf32, #tpu.memory_space<vmem>>, %arg14: memref<8x16xf32, #tpu.memory_space<vmem>>) attributes {dimension_semantics = [#tpu.dimension_semantics<parallel>, #tpu.dimension_semantics<parallel>, #tpu.dimension_semantics<arbitrary>], iteration_bounds = array<i64: 2, 1, 1>, scalar_prefetch = 0 : i64, scratch_operands = 3 : i64, tpu.core_type = #tpu.core_type<tc>, window_params = [{transform_indices = @transform_0, window_bounds = array<i64: 1, 8, 32>}, {transform_indices = @transform_1, window_bounds = array<i64: 32, 32>}, {transform_indices = @transform_2, window_bounds = array<i64: 32, 16>}, {transform_indices = @transform_3, window_bounds = array<i64: 32, 16>}, {transform_indices = @transform_4, window_bounds = array<i64: 8, 8>}, {transform_indices = @transform_5, window_bounds = array<i64: 8, 8>}, {transform_indices = @transform_6, window_bounds = array<i64: 1, 4, 8, 8>}, {transform_indices = @transform_7, window_bounds = array<i64: 1, 2, 8, 8>}, {transform_indices = @transform_8, window_bounds = array<i64: 1, 2, 8, 8>}]} {
    %c0_i32 = arith.constant 0 : i32
    %0 = arith.cmpi eq, %arg2, %c0_i32 : i32
    %1 = arith.extui %0 : i1 to i32
    %c0_i32_0 = arith.constant 0 : i32
    %2 = arith.cmpi ne, %1, %c0_i32_0 : i32
    scf.if %2 {
      %cst_25 = arith.constant 0.000000e+00 : f32
      %23 = vector.broadcast %cst_25 : f32 to vector<8x32xf32>
      %c0_26 = arith.constant 0 : index
      %c0_27 = arith.constant 0 : index
      %24 = vector.load %arg12[%c0_26, %c0_27] : memref<8x32xf32, #tpu.memory_space<vmem>>, vector<8x32xf32>
      tpu.vector_store %arg12[%c0_26, %c0_27], %23 {strides = array<i32>} : memref<8x32xf32, #tpu.memory_space<vmem>>, vector<8x32xf32>,
      %cst_28 = arith.constant 0.000000e+00 : f32
      %25 = vector.broadcast %cst_28 : f32 to vector<8x16xf32>
      %c0_29 = arith.constant 0 : index
      %c0_30 = arith.constant 0 : index
      %26 = vector.load %arg13[%c0_29, %c0_30] : memref<8x16xf32, #tpu.memory_space<vmem>>, vector<8x16xf32>
      tpu.vector_store %arg13[%c0_29, %c0_30], %25 {strides = array<i32>} : memref<8x16xf32, #tpu.memory_space<vmem>>, vector<8x16xf32>,
      %cst_31 = arith.constant 0.000000e+00 : f32
      %27 = vector.broadcast %cst_31 : f32 to vector<8x16xf32>
      %c0_32 = arith.constant 0 : index
      %c0_33 = arith.constant 0 : index
      %28 = vector.load %arg14[%c0_32, %c0_33] : memref<8x16xf32, #tpu.memory_space<vmem>>, vector<8x16xf32>
      tpu.vector_store %arg14[%c0_32, %c0_33], %27 {strides = array<i32>} : memref<8x16xf32, #tpu.memory_space<vmem>>, vector<8x16xf32>,
    } else {
    }
    %c0 = arith.constant 0 : index
    %c0_1 = arith.constant 0 : index
    %c0_2 = arith.constant 0 : index
    %3 = vector.load %arg3[%c0, %c0_1, %c0_2] : memref<1x8x32xf32, #tpu.memory_space<vmem>>, vector<1x8x32xf32>
    %4 = vector.shape_cast %3 : vector<1x8x32xf32> to vector<8x32xf32>
    %c0_3 = arith.constant 0 : index
    %c0_4 = arith.constant 0 : index
    %5 = vector.load %arg12[%c0_3, %c0_4] : memref<8x32xf32, #tpu.memory_space<vmem>>, vector<8x32xf32>
    %c0_5 = arith.constant 0 : index
    %c0_6 = arith.constant 0 : index
    %6 = vector.load %arg4[%c0_5, %c0_6] : memref<32x32xf32, #tpu.memory_space<vmem>>, vector<32x32xf32>
    %cst = arith.constant dense<0.000000e+00> : vector<8x32xf32>
    %7 = tpu.matmul %4, %6, %cst {dimension_numbers = #tpu.dot_dimension_numbers<[1], [0], [0], [1], [0, 0, 1, 1], [], []>} : vector<8x32xf32>, vector<32x32xf32>, vector<8x32xf32> -> vector<8x32xf32>
    %8 = arith.addf %5, %7 : vector<8x32xf32>
    %c0_7 = arith.constant 0 : index
    %c0_8 = arith.constant 0 : index
    %9 = vector.load %arg12[%c0_7, %c0_8] : memref<8x32xf32, #tpu.memory_space<vmem>>, vector<8x32xf32>
    tpu.vector_store %arg12[%c0_7, %c0_8], %8 {strides = array<i32>} : memref<8x32xf32, #tpu.memory_space<vmem>>, vector<8x32xf32>,
    %c0_9 = arith.constant 0 : index
    %c0_10 = arith.constant 0 : index
    %10 = vector.load %arg13[%c0_9, %c0_10] : memref<8x16xf32, #tpu.memory_space<vmem>>, vector<8x16xf32>
    %c0_11 = arith.constant 0 : index
    %c0_12 = arith.constant 0 : index
    %11 = vector.load %arg5[%c0_11, %c0_12] : memref<32x16xf32, #tpu.memory_space<vmem>>, vector<32x16xf32>
    %cst_13 = arith.constant dense<0.000000e+00> : vector<8x16xf32>
    %12 = tpu.matmul %4, %11, %cst_13 {dimension_numbers = #tpu.dot_dimension_numbers<[1], [0], [0], [1], [0, 0, 1, 1], [], []>} : vector<8x32xf32>, vector<32x16xf32>, vector<8x16xf32> -> vector<8x16xf32>
    %13 = arith.addf %10, %12 : vector<8x16xf32>
    %c0_14 = arith.constant 0 : index
    %c0_15 = arith.constant 0 : index
    %14 = vector.load %arg13[%c0_14, %c0_15] : memref<8x16xf32, #tpu.memory_space<vmem>>, vector<8x16xf32>
    tpu.vector_store %arg13[%c0_14, %c0_15], %13 {strides = array<i32>} : memref<8x16xf32, #tpu.memory_space<vmem>>, vector<8x16xf32>,
    %c0_16 = arith.constant 0 : index
    %c0_17 = arith.constant 0 : index
    %15 = vector.load %arg14[%c0_16, %c0_17] : memref<8x16xf32, #tpu.memory_space<vmem>>, vector<8x16xf32>
    %c0_18 = arith.constant 0 : index
    %c0_19 = arith.constant 0 : index
    %16 = vector.load %arg6[%c0_18, %c0_19] : memref<32x16xf32, #tpu.memory_space<vmem>>, vector<32x16xf32>
    %cst_20 = arith.constant dense<0.000000e+00> : vector<8x16xf32>
    %17 = tpu.matmul %4, %16, %cst_20 {dimension_numbers = #tpu.dot_dimension_numbers<[1], [0], [0], [1], [0, 0, 1, 1], [], []>} : vector<8x32xf32>, vector<32x16xf32>, vector<8x16xf32> -> vector<8x16xf32>
    %18 = arith.addf %15, %17 : vector<8x16xf32>
    %c0_21 = arith.constant 0 : index
    %c0_22 = arith.constant 0 : index
    %19 = vector.load %arg14[%c0_21, %c0_22] : memref<8x16xf32, #tpu.memory_space<vmem>>, vector<8x16xf32>
    tpu.vector_store %arg14[%c0_21, %c0_22], %18 {strides = array<i32>} : memref<8x16xf32, #tpu.memory_space<vmem>>, vector<8x16xf32>,
    %c0_i32_23 = arith.constant 0 : i32
    %20 = arith.cmpi eq, %arg2, %c0_i32_23 : i32
    %21 = arith.extui %20 : i1 to i32
    %c0_i32_24 = arith.constant 0 : i32
    %22 = arith.cmpi ne, %21, %c0_i32_24 : i32
    scf.if %22 {
      %c0_25 = arith.constant 0 : index
      %c0_26 = arith.constant 0 : index
      %23 = vector.load %arg7[%c0_25, %c0_26] : memref<8x8xf32, #tpu.memory_space<vmem>>, vector<8x8xf32>
      %c0_27 = arith.constant 0 : index
      %c0_28 = arith.constant 0 : index
      %24 = vector.load %arg8[%c0_27, %c0_28] : memref<8x8xf32, #tpu.memory_space<vmem>>, vector<8x8xf32>
      %c0_29 = arith.constant 0 : index
      %c0_30 = arith.constant 0 : index
      %25 = vector.load %arg12[%c0_29, %c0_30] : memref<8x32xf32, #tpu.memory_space<vmem>>, vector<8x8xf32>
      %26 = vector.extract_strided_slice %25 {offsets = [0, 4], sizes = [8, 4], strides = [1, 1]} : vector<8x8xf32> to vector<8x4xf32>
      %27 = vector.extract_strided_slice %25 {offsets = [0, 0], sizes = [8, 4], strides = [1, 1]} : vector<8x8xf32> to vector<8x4xf32>
      %28 = tpu.concatenate %26, %27 in 1 : vector<8x4xf32>, vector<8x4xf32> -> vector<8x8xf32>
      %29 = arith.mulf %25, %23 : vector<8x8xf32>
      %30 = arith.mulf %28, %24 : vector<8x8xf32>
      %31 = arith.addf %29, %30 : vector<8x8xf32>
      %cst_31 = arith.constant 0.510069728 : f32
      %32 = vector.broadcast %cst_31 : f32 to vector<8x8xf32>
      %33 = arith.mulf %31, %32 : vector<8x8xf32>
      %c0_32 = arith.constant 0 : index
      %c0_33 = arith.constant 0 : index
      %c0_34 = arith.constant 0 : index
      %c0_35 = arith.constant 0 : index
      %34 = vector.load %arg9[%c0_32, %c0_33, %c0_34, %c0_35] : memref<1x4x8x8xf32, #tpu.memory_space<vmem>>, vector<1x1x8x8xf32>
      %35 = vector.shape_cast %34 : vector<1x1x8x8xf32> to vector<8x8xf32>
      %36 = vector.shape_cast %33 : vector<8x8xf32> to vector<1x1x8x8xf32>
      tpu.vector_store %arg9[%c0_32, %c0_33, %c0_34, %c0_35], %36 {strides = array<i32>} : memref<1x4x8x8xf32, #tpu.memory_space<vmem>>, vector<1x1x8x8xf32>,
      %c0_36 = arith.constant 0 : index
      %c8 = arith.constant 8 : index
      %37 = vector.load %arg12[%c0_36, %c8] : memref<8x32xf32, #tpu.memory_space<vmem>>, vector<8x8xf32>
      %38 = vector.extract_strided_slice %37 {offsets = [0, 4], sizes = [8, 4], strides = [1, 1]} : vector<8x8xf32> to vector<8x4xf32>
      %39 = vector.extract_strided_slice %37 {offsets = [0, 0], sizes = [8, 4], strides = [1, 1]} : vector<8x8xf32> to vector<8x4xf32>
      %40 = tpu.concatenate %38, %39 in 1 : vector<8x4xf32>, vector<8x4xf32> -> vector<8x8xf32>
      %41 = arith.mulf %37, %23 : vector<8x8xf32>
      %42 = arith.mulf %40, %24 : vector<8x8xf32>
      %43 = arith.addf %41, %42 : vector<8x8xf32>
      %cst_37 = arith.constant 0.510069728 : f32
      %44 = vector.broadcast %cst_37 : f32 to vector<8x8xf32>
      %45 = arith.mulf %43, %44 : vector<8x8xf32>
      %c0_38 = arith.constant 0 : index
      %c1 = arith.constant 1 : index
      %c0_39 = arith.constant 0 : index
      %c0_40 = arith.constant 0 : index
      %46 = vector.load %arg9[%c0_38, %c1, %c0_39, %c0_40] : memref<1x4x8x8xf32, #tpu.memory_space<vmem>>, vector<1x1x8x8xf32>
      %47 = vector.shape_cast %46 : vector<1x1x8x8xf32> to vector<8x8xf32>
      %48 = vector.shape_cast %45 : vector<8x8xf32> to vector<1x1x8x8xf32>
      tpu.vector_store %arg9[%c0_38, %c1, %c0_39, %c0_40], %48 {strides = array<i32>} : memref<1x4x8x8xf32, #tpu.memory_space<vmem>>, vector<1x1x8x8xf32>,
      %c0_41 = arith.constant 0 : index
      %c16 = arith.constant 16 : index
      %49 = vector.load %arg12[%c0_41, %c16] : memref<8x32xf32, #tpu.memory_space<vmem>>, vector<8x8xf32>
      %50 = vector.extract_strided_slice %49 {offsets = [0, 4], sizes = [8, 4], strides = [1, 1]} : vector<8x8xf32> to vector<8x4xf32>
      %51 = vector.extract_strided_slice %49 {offsets = [0, 0], sizes = [8, 4], strides = [1, 1]} : vector<8x8xf32> to vector<8x4xf32>
      %52 = tpu.concatenate %50, %51 in 1 : vector<8x4xf32>, vector<8x4xf32> -> vector<8x8xf32>
      %53 = arith.mulf %49, %23 : vector<8x8xf32>
      %54 = arith.mulf %52, %24 : vector<8x8xf32>
      %55 = arith.addf %53, %54 : vector<8x8xf32>
      %cst_42 = arith.constant 0.510069728 : f32
      %56 = vector.broadcast %cst_42 : f32 to vector<8x8xf32>
      %57 = arith.mulf %55, %56 : vector<8x8xf32>
      %c0_43 = arith.constant 0 : index
      %c2 = arith.constant 2 : index
      %c0_44 = arith.constant 0 : index
      %c0_45 = arith.constant 0 : index
      %58 = vector.load %arg9[%c0_43, %c2, %c0_44, %c0_45] : memref<1x4x8x8xf32, #tpu.memory_space<vmem>>, vector<1x1x8x8xf32>
      %59 = vector.shape_cast %58 : vector<1x1x8x8xf32> to vector<8x8xf32>
      %60 = vector.shape_cast %57 : vector<8x8xf32> to vector<1x1x8x8xf32>
      tpu.vector_store %arg9[%c0_43, %c2, %c0_44, %c0_45], %60 {strides = array<i32>} : memref<1x4x8x8xf32, #tpu.memory_space<vmem>>, vector<1x1x8x8xf32>,
      %c0_46 = arith.constant 0 : index
      %c24 = arith.constant 24 : index
      %61 = vector.load %arg12[%c0_46, %c24] : memref<8x32xf32, #tpu.memory_space<vmem>>, vector<8x8xf32>
      %62 = vector.extract_strided_slice %61 {offsets = [0, 4], sizes = [8, 4], strides = [1, 1]} : vector<8x8xf32> to vector<8x4xf32>
      %63 = vector.extract_strided_slice %61 {offsets = [0, 0], sizes = [8, 4], strides = [1, 1]} : vector<8x8xf32> to vector<8x4xf32>
      %64 = tpu.concatenate %62, %63 in 1 : vector<8x4xf32>, vector<8x4xf32> -> vector<8x8xf32>
      %65 = arith.mulf %61, %23 : vector<8x8xf32>
      %66 = arith.mulf %64, %24 : vector<8x8xf32>
      %67 = arith.addf %65, %66 : vector<8x8xf32>
      %cst_47 = arith.constant 0.510069728 : f32
      %68 = vector.broadcast %cst_47 : f32 to vector<8x8xf32>
      %69 = arith.mulf %67, %68 : vector<8x8xf32>
      %c0_48 = arith.constant 0 : index
      %c3 = arith.constant 3 : index
      %c0_49 = arith.constant 0 : index
      %c0_50 = arith.constant 0 : index
      %70 = vector.load %arg9[%c0_48, %c3, %c0_49, %c0_50] : memref<1x4x8x8xf32, #tpu.memory_space<vmem>>, vector<1x1x8x8xf32>
      %71 = vector.shape_cast %70 : vector<1x1x8x8xf32> to vector<8x8xf32>
      %72 = vector.shape_cast %69 : vector<8x8xf32> to vector<1x1x8x8xf32>
      tpu.vector_store %arg9[%c0_48, %c3, %c0_49, %c0_50], %72 {strides = array<i32>} : memref<1x4x8x8xf32, #tpu.memory_space<vmem>>, vector<1x1x8x8xf32>,
      %c0_51 = arith.constant 0 : index
      %c0_52 = arith.constant 0 : index
      %73 = vector.load %arg13[%c0_51, %c0_52] : memref<8x16xf32, #tpu.memory_space<vmem>>, vector<8x8xf32>
      %74 = vector.extract_strided_slice %73 {offsets = [0, 4], sizes = [8, 4], strides = [1, 1]} : vector<8x8xf32> to vector<8x4xf32>
      %75 = vector.extract_strided_slice %73 {offsets = [0, 0], sizes = [8, 4], strides = [1, 1]} : vector<8x8xf32> to vector<8x4xf32>
      %76 = tpu.concatenate %74, %75 in 1 : vector<8x4xf32>, vector<8x4xf32> -> vector<8x8xf32>
      %77 = arith.mulf %73, %23 : vector<8x8xf32>
      %78 = arith.mulf %76, %24 : vector<8x8xf32>
      %79 = arith.addf %77, %78 : vector<8x8xf32>
      %c0_53 = arith.constant 0 : index
      %c0_54 = arith.constant 0 : index
      %c0_55 = arith.constant 0 : index
      %c0_56 = arith.constant 0 : index
      %80 = vector.load %arg10[%c0_53, %c0_54, %c0_55, %c0_56] : memref<1x2x8x8xf32, #tpu.memory_space<vmem>>, vector<1x1x8x8xf32>
      %81 = vector.shape_cast %80 : vector<1x1x8x8xf32> to vector<8x8xf32>
      %82 = vector.shape_cast %79 : vector<8x8xf32> to vector<1x1x8x8xf32>
      tpu.vector_store %arg10[%c0_53, %c0_54, %c0_55, %c0_56], %82 {strides = array<i32>} : memref<1x2x8x8xf32, #tpu.memory_space<vmem>>, vector<1x1x8x8xf32>,
      %c0_57 = arith.constant 0 : index
      %c0_58 = arith.constant 0 : index
      %83 = vector.load %arg14[%c0_57, %c0_58] : memref<8x16xf32, #tpu.memory_space<vmem>>, vector<8x8xf32>
      %c0_59 = arith.constant 0 : index
      %c0_60 = arith.constant 0 : index
      %c0_61 = arith.constant 0 : index
      %c0_62 = arith.constant 0 : index
      %84 = vector.load %arg11[%c0_59, %c0_60, %c0_61, %c0_62] : memref<1x2x8x8xf32, #tpu.memory_space<vmem>>, vector<1x1x8x8xf32>
      %85 = vector.shape_cast %84 : vector<1x1x8x8xf32> to vector<8x8xf32>
      %86 = vector.shape_cast %83 : vector<8x8xf32> to vector<1x1x8x8xf32>
      tpu.vector_store %arg11[%c0_59, %c0_60, %c0_61, %c0_62], %86 {strides = array<i32>} : memref<1x2x8x8xf32, #tpu.memory_space<vmem>>, vector<1x1x8x8xf32>,
      %c0_63 = arith.constant 0 : index
      %c8_64 = arith.constant 8 : index
      %87 = vector.load %arg13[%c0_63, %c8_64] : memref<8x16xf32, #tpu.memory_space<vmem>>, vector<8x8xf32>
      %88 = vector.extract_strided_slice %87 {offsets = [0, 4], sizes = [8, 4], strides = [1, 1]} : vector<8x8xf32> to vector<8x4xf32>
      %89 = vector.extract_strided_slice %87 {offsets = [0, 0], sizes = [8, 4], strides = [1, 1]} : vector<8x8xf32> to vector<8x4xf32>
      %90 = tpu.concatenate %88, %89 in 1 : vector<8x4xf32>, vector<8x4xf32> -> vector<8x8xf32>
      %91 = arith.mulf %87, %23 : vector<8x8xf32>
      %92 = arith.mulf %90, %24 : vector<8x8xf32>
      %93 = arith.addf %91, %92 : vector<8x8xf32>
      %c0_65 = arith.constant 0 : index
      %c1_66 = arith.constant 1 : index
      %c0_67 = arith.constant 0 : index
      %c0_68 = arith.constant 0 : index
      %94 = vector.load %arg10[%c0_65, %c1_66, %c0_67, %c0_68] : memref<1x2x8x8xf32, #tpu.memory_space<vmem>>, vector<1x1x8x8xf32>
      %95 = vector.shape_cast %94 : vector<1x1x8x8xf32> to vector<8x8xf32>
      %96 = vector.shape_cast %93 : vector<8x8xf32> to vector<1x1x8x8xf32>
      tpu.vector_store %arg10[%c0_65, %c1_66, %c0_67, %c0_68], %96 {strides = array<i32>} : memref<1x2x8x8xf32, #tpu.memory_space<vmem>>, vector<1x1x8x8xf32>,
      %c0_69 = arith.constant 0 : index
      %c8_70 = arith.constant 8 : index
      %97 = vector.load %arg14[%c0_69, %c8_70] : memref<8x16xf32, #tpu.memory_space<vmem>>, vector<8x8xf32>
      %c0_71 = arith.constant 0 : index
      %c1_72 = arith.constant 1 : index
      %c0_73 = arith.constant 0 : index
      %c0_74 = arith.constant 0 : index
      %98 = vector.load %arg11[%c0_71, %c1_72, %c0_73, %c0_74] : memref<1x2x8x8xf32, #tpu.memory_space<vmem>>, vector<1x1x8x8xf32>
      %99 = vector.shape_cast %98 : vector<1x1x8x8xf32> to vector<8x8xf32>
      %100 = vector.shape_cast %97 : vector<8x8xf32> to vector<1x1x8x8xf32>
      tpu.vector_store %arg11[%c0_71, %c1_72, %c0_73, %c0_74], %100 {strides = array<i32>} : memref<1x2x8x8xf32, #tpu.memory_space<vmem>>, vector<1x1x8x8xf32>,
    } else {
    }
    return
  }
  func.func @transform_0(%arg0: i32, %arg1: i32, %arg2: i32) -> (i32, i32, i32) {
    %c0_i32 = arith.constant 0 : i32
    return %arg0, %arg1, %arg2 : i32, i32, i32
  }
  func.func @transform_1(%arg0: i32, %arg1: i32, %arg2: i32) -> (i32, i32) {
    %c0_i32 = arith.constant 0 : i32
    %c0_i32_0 = arith.constant 0 : i32
    return %arg2, %c0_i32 : i32, i32
  }
  func.func @transform_2(%arg0: i32, %arg1: i32, %arg2: i32) -> (i32, i32) {
    %c0_i32 = arith.constant 0 : i32
    %c0_i32_0 = arith.constant 0 : i32
    return %arg2, %c0_i32 : i32, i32
  }
  func.func @transform_3(%arg0: i32, %arg1: i32, %arg2: i32) -> (i32, i32) {
    %c0_i32 = arith.constant 0 : i32
    %c0_i32_0 = arith.constant 0 : i32
    return %arg2, %c0_i32 : i32, i32
  }
  func.func @transform_4(%arg0: i32, %arg1: i32, %arg2: i32) -> (i32, i32) {
    %c0_i32 = arith.constant 0 : i32
    %c0_i32_0 = arith.constant 0 : i32
    return %arg1, %c0_i32 : i32, i32
  }
  func.func @transform_5(%arg0: i32, %arg1: i32, %arg2: i32) -> (i32, i32) {
    %c0_i32 = arith.constant 0 : i32
    %c0_i32_0 = arith.constant 0 : i32
    return %arg1, %c0_i32 : i32, i32
  }
  func.func @transform_6(%arg0: i32, %arg1: i32, %arg2: i32) -> (i32, i32, i32, i32) {
    %c0_i32 = arith.constant 0 : i32
    %c0_i32_0 = arith.constant 0 : i32
    %c0_i32_1 = arith.constant 0 : i32
    return %arg0, %c0_i32, %arg1, %c0_i32_0 : i32, i32, i32, i32
  }
  func.func @transform_7(%arg0: i32, %arg1: i32, %arg2: i32) -> (i32, i32, i32, i32) {
    %c0_i32 = arith.constant 0 : i32
    %c0_i32_0 = arith.constant 0 : i32
    %c0_i32_1 = arith.constant 0 : i32
    return %arg0, %c0_i32, %arg1, %c0_i32_0 : i32, i32, i32, i32
  }
  func.func @transform_8(%arg0: i32, %arg1: i32, %arg2: i32) -> (i32, i32, i32, i32) {
    %c0_i32 = arith.constant 0 : i32
    %c0_i32_0 = arith.constant 0 : i32
    %c0_i32_1 = arith.constant 0 : i32
    return %arg0, %c0_i32, %arg1, %c0_i32_0 : i32, i32, i32, i32
  }
}

</mosaic_0001>

<bundles_post_ra>
// kernel: tpu_custom_call.1
= control target key start
LH: loop header
LB: loop body
LE: loop exit
PB: predicated region body
PF: predicated region fallthrough
CT: control target
= control target key end

     0   :  { %s1859_s0 = inlined_call_operand.vmem [shape: f32[2,8,32], index: 0, kind: input, shape index: {}]   ;;  %s1860_s1 = inlined_call_operand.vmem [shape: f32[32,32], index: 1, kind: input, shape index: {}]   ;;  %s1861_s2 = inlined_call_operand.vmem [shape: f32[32,16], index: 2, kind: input, shape index: {}]   ;;  %s1862_s3 = inlined_call_operand.vmem [shape: f32[32,16], index: 3, kind: input, shape index: {}]   ;;  %s1863_s4 = inlined_call_operand.vmem [shape: f32[8,8], index: 4, kind: input, shape index: {}]   ;;  %s1864_s5 = inlined_call_operand.vmem [shape: f32[8,8], index: 5, kind: input, shape index: {}]   ;;  %s1865_s6 = inlined_call_operand.hbm [shape: f32[2,4,8,8], index: 6, kind: output, shape index: {0}]   ;;  %s1866_s7 = inlined_call_operand.hbm [shape: f32[2,2,8,8], index: 7, kind: output, shape index: {1}]   ;;  %s1867_s8 = inlined_call_operand.hbm [shape: f32[2,2,8,8], index: 8, kind: output, shape index: {2}]  }
   0x1   :  { %1873 = sst [smem:[#allocation12_spill]] %s1859_s0 }
   0x2   :  { %1874 = sst [smem:[#allocation13_spill]] %s1860_s1 }
   0x3   :  { %1875 = sst [smem:[#allocation14_spill]] %s1861_s2 }
   0x4   :  { %1876 = sst [smem:[#allocation15_spill]] %s1862_s3 }
   0x5   :  { %1877 = sst [smem:[#allocation16_spill]] %s1863_s4 }
   0x6   :  { %14 = vsyncpa [#allocation6], 0 }
   0x7   :  { %16 = vsyncpa [#allocation6 + $0x1], 0 }
   0x8   :  { %17 = vsyncpa [#allocation8], 0 }
   0x9   :  { %19 = vsyncpa [#allocation8 + $0x1], 0  ;;  %s1521_s27 = smov 0   ;;  %s1523_s28 = smov 0  }
   0xa   :  { %s1525_s29 = smov 0   ;;  %s1527_s30 = smov 0  }
   0xb   :  { %s1529_s9 = smov 0   ;;  %s1531_s10 = smov 0  }
   0xc LB: > { %s1136_s11 = sadd.s32 4294967295, %s1456_s10   ;;  %s1868_s12 = sadd.s32 4294967294, %s1456_s10   ;;  %s1456_s10 = sphi %s1531_s10, %s25_s10   ;;  %s1452_s9 = sphi %s1529_s9, %s1893_s9   ;;  %s1448_s30 = sphi %s1527_s30, %s1892_s30   ;;  %s1444_s29 = sphi %s1525_s29, %s1891_s29   ;;  %s1440_s28 = sphi %s1523_s28, %s1890_s28   ;;  %s1436_s27 = sphi %s1521_s27, %s1889_s27  }
   0xd   : > { %s44_s13 = sadd.s32 1, %s1452_s9  ;;  %s213_s14 = sadd.s32 1, %s1444_s29 }
   0xe   : > { %p46_p0 = scmp.ge.s32.totalorder %s44_s13, 2  ;;  %p223_p1 = scmp.ne.s32.totalorder %s1444_s29, %s1440_s28 }
   0xf   : > { %p224_p2 = scmp.eq.s32.totalorder %s1136_s11, 1  ;;  %p229_p3 = scmp.ne.s32.totalorder %s1440_s28, %s1436_s27 }
  0x10   : > { %s1895_s13 = smov (%p46_p0, %s44_s13), 0  ;;  %p230_p5 = scmp.eq.s32.totalorder %s1868_s12, 1 }
  0x11   : > { %p1563_p4 = por %p224_p2, %p223_p1  ;;  %s208_s16 = ssub.s32 %s1452_s9, %s1895_s13 }
  0x12   : > { %p1145_p6 = scmp.ge.s32.totalorder %s1456_s10, 1  ;;  %p211_p7 = scmp.eq.s32.totalorder %s208_s16, 0 }
  0x13   : > { %p1572_p8 = por %p230_p5, %p229_p3  ;;  %p358_p9 = scmp.lt.s32.totalorder %s1456_s10, 3 }
  0x14   : > { %s1578_s18 = scalar_select %p211_p7, %s1444_s29, %s213_s14  }
  0x15   : > { %p359_p10 = pnand %p1145_p6, %p358_p9 }
  0x16   : > { %s1880_s1 = sld [smem:[#allocation13_spill]] (!%p359_p10)  ;;  %v1458_v3 = vmov (!%p359_p10), 0.0|0.0   ;;  %vm1459_vm0 = vmmov (!%p359_p10), 0   ;;  %v1460_v6 = vmov (!%p359_p10), 0.0   ;;  %p430_p11 = scmp.lt.s32.totalorder (!%p359_p10), %s1448_s30, 1  ;;  %vm470_vm1 = vcmask (!%p359_p10), 261120  }
  0x17   : > { %362 = sbr.rel (%p359_p10) target bundleno = 686 (0x2ae), region = 44  ;;  %1220 = vmatprep.subr.bf16.mxu0 (!%p359_p10), %v1458_v3  ;;  %1195 = vmatprep.mubr.msk.f32.mxu0 (!%p359_p10), %vm1459_vm0, %v1460_v6  ;;  %s1881_s2 = sld [smem:[#allocation14_spill]] (!%p359_p10)  ;;  %471 = vst.msk [vmem:[#allocation2] sm:$0xff] (!%p359_p10), %vm470_vm1, %v1460_v6  ;;  %vm472_vm2 = vcmask (!%p359_p10), 130048   ;;  %vm725_vm3 = vcmask (!%p359_p10), 31744   ;;  %v1658_v38 = vld [vmem:[%s1864_s5] sm:$0xff] (!%p359_p10) }
  0x18   : > { %1226 = vmatprep.subr.bf16.mxu1 (!%p359_p10), %v1458_v3  ;;  %1206 = vmatprep.mubr.msk.f32.mxu1 (!%p359_p10), %vm1459_vm0, %v1460_v6  ;;  %s1882_s0 = sld [smem:[#allocation12_spill]] (!%p359_p10)  ;;  %473 = vst.msk [vmem:[#allocation3] sm:$0xff] (!%p359_p10), %vm472_vm2, %v1460_v6  ;;  %474 = vst.msk [vmem:[#allocation4] sm:$0xff] (!%p359_p10), %vm472_vm2, %v1460_v6  ;;  %s1883_s3 = sld [smem:[#allocation15_spill]] (!%p359_p10)  ;;  %vm731_vm4 = vcmask (!%p359_p10), 64512  }
  0x19   : > { %s1461_s16 = smov (!%p359_p10), 108   ;;  %s1463_s20 = smov (!%p359_p10), 124  }
  0x1a   : > { %s1464_s21 = smov (!%p359_p10), 100   ;;  %s1884_s4 = sld [smem:[#allocation16_spill]] (!%p359_p10) }
  0x1b   : > { %s1465_s24 = smov (!%p359_p10), 16   ;;  %s1468_s23 = smov (!%p359_p10), 4  }
  0x1c   : > { %v477_v0 = vld [vmem:[%s1880_s1] sm:$0xff] (!%p359_p10)  ;;  %v478_v1 = vld [vmem:[%s1880_s1 + $0x8] sm:$0xff] (!%p359_p10)  ;;  %v479_v2 = vld [vmem:[%s1880_s1 + $0x10] sm:$0xff] (!%p359_p10)  ;;  %s1471_s14 = smov (!%p359_p10), 112  }
  0x1d   : > { %v1221_v4 = vpack.c.bf16 (!%p359_p10), %v478_v1, %v477_v0  ;;  %v480_v5 = vld [vmem:[%s1880_s1 + $0x18] sm:$0xff] (!%p359_p10)  ;;  %v558_v7 = vld [vmem:[%s1881_s2] sm:$0xff] (!%p359_p10)  ;;  %v559_v8 = vld [vmem:[%s1881_s2 + $0x8] sm:$0xff] (!%p359_p10) }
  0x1e   : > { %v1227_v9 = vpack.c.bf16 %v559_v8, %v558_v7  ;;  %v560_v10 = vld [vmem:[%s1881_s2 + $0x10] sm:$0xff]  ;;  %v561_v11 = vld [vmem:[%s1881_s2 + $0x18] sm:$0xff]  ;;  %v1224_v12 = vpack.c.bf16 %v480_v5, %v479_v2  ;;  %s431_s25 = scalar_select %p430_p11, %s1448_s30, 1  ;;  %v636_v15 = vld [vmem:[%s1883_s3] sm:$0xff] }
  0x1f   : > { %1222 = vmatpush3.bf16.msra.mxu0 %v1221_v4  ;;  %v1230_v13 = vpack.c.bf16 %v561_v11, %v560_v10  ;;  %v637_v16 = vld [vmem:[%s1883_s3 + $0x8] sm:$0xff]  ;;  %v638_v17 = vld [vmem:[%s1883_s3 + $0x10] sm:$0xff]  ;;  %v639_v19 = vld [vmem:[%s1883_s3 + $0x18] sm:$0xff]  ;;  %s1472_s2 = smov [#allocation7]  }
  0x20   : > { %1223 = vmatprep.subr.bf16.mxu0 %v1458_v3  ;;  %1228 = vmatpush3.bf16.msra.mxu1 %v1227_v9  ;;  %s1149_s26 = sshll.u32 %s431_s25, 3  ;;  %v1233_v18 = vpack.c.bf16 %v637_v16, %v636_v15  ;;  %v1236_v20 = vpack.c.bf16 %v639_v19, %v638_v17  ;;  %v476_v21 = vld [vmem:[#allocation2] sm:$0xff]  ;;  %v557_v22 = vld [vmem:[#allocation3] sm:$0xff]  ;;  %s1869_s25 = smov 8   ;;  %v635_v34 = vld [vmem:[#allocation4] sm:$0xff] }
  0x21   : > { %1229 = vmatprep.subr.bf16.mxu1 %v1458_v3  ;;  %s439_s19 = scalar_lea.vmem %s1882_s0, %s1149_s26  ;;  %v1649_v31 = vld [vmem:[%s1884_s4] sm:$0xff]  ;;  %s1467_s26 = smov 24  }
  0x22   : > { %v475_v14 = vld [vmem:[%s439_s19] sm:$0xff]  ;;  %s1462_s19 = smov 116   ;;  %s1322_s3 = sshll.u32 %s1472_s2, 4  ;;  %s1323_s3 = int_to_ptr.vmem [resolvable:$false] %s1322_s3 }
  0x23   : > { %1225 = vmatpush3.bf16.msra.mxu0 %v1224_v12  ;;  %s1324_s4 = scalar_lea.vmem %s1323_s3, 512 }
  0x24   : > { %1231 = vmatpush3.bf16.msra.mxu1 %v1230_v13  ;;  %1232 = vmatprep.subr.bf16.mxu0 %v1458_v3 }
  0x26   : > { %1196 = vmatmul.mubr.msk.f32.vlgmr.msra.gmra.mrb[0].mxu0 %vm470_vm1, %v475_v14 }
  0x27   : > { %1207 = vmatmul.mubr.msk.f32.vlgmr.msra.gmra.mrb[0].mxu1 %vm470_vm1, %v475_v14  ;;  %1217 = vmatprep.mubr.msk.f32.mxu0 %vm1459_vm0, %v1460_v6 }
  0x28   : > { %1234 = vmatpush3.bf16.msra.mxu0 %v1233_v18 }
  0x29   : > { %1235 = vmatprep.subr.bf16.mxu0 %v1458_v3 }
  0x2c   : > { %1237 = vmatpush3.bf16.msra.mxu0 %v1236_v20 }
  0x2f   : > { %1218 = vmatmul.mubr.msk.f32.vlgmr.msra.gmra.mrb[2].mxu0 %vm470_vm1, %v475_v14 }
  0xf9   : > { %v551_v23 = vpop.f32.mrb[0].mxu0 }
  0xfa   : > { %v555_v24 = vadd.f32 %v551_v23, %v476_v21  ;;  %v1197_v25 = vpop.f32.mrb[1].mxu0  ;;  %v628_v26 = vpop.f32.mrb[0].mxu1 }
  0xfb   : > { %v632_v27 = vadd.f32 %v628_v26, %v557_v22  ;;  %v1208_v28 = vpop.f32.mrb[1].mxu1 }
  0xfc   : > { %556 = vst.msk [vmem:[#allocation2] sm:$0xff] %vm470_vm1, %v555_v24 }
  0xfd   : > { %634 = vst.msk [vmem:[#allocation3] sm:$0xff] %vm472_vm2, %v632_v27 }
 0x102   : > { %v706_v35 = vpop.f32.mrb[2].mxu0 }
 0x103   : > { %v1632_v29 = vld [vmem:[#allocation2] sm:$0xff]  ;;  %v710_v36 = vadd.f32 %v706_v35, %v635_v34  ;;  %v1219_v37 = vpop.f32.mrb[3].mxu0 }
 0x104   : > { %762 = vrot.lane.b32.xlu1 %v1632_v29, %s1461_s16  ;;  %735 = vrot.lane.b32.xlu0 %v1632_v29, %s1462_s19  ;;  %v1641_v30 = vld [vmem:[#allocation3] sm:$0xff]  ;;  %v727_v11 = vmul.f32 %v1632_v29, %v1649_v31 }
 0x105   : > { %711 = vst.msk [vmem:[#allocation4] sm:$0xff] %vm472_vm2, %v710_v36  ;;  %v821_v17 = vmul.f32 %v1641_v30, %v1649_v31 }
 0x108   : > { %765 = vrot.lane.b32.xlu1 %v1632_v29, %s1462_s19  ;;  %738 = vrot.lane.b32.xlu0 %v1632_v29, %s1463_s20 }
 0x10c   : > { %791 = vrot.lane.b32.xlu1 %v1632_v29, %s1461_s16  ;;  %788 = vrot.lane.b32.xlu0 %v1632_v29, %s1464_s21  ;;  %v849_v51 = vld [vmem:[#allocation4] sm:$0xff] }
 0x110   : > { %832 = vrot.lane.b32.xlu1 %v1641_v30, %s1463_s20  ;;  %829 = vrot.lane.b32.xlu0 %v1641_v30, %s1462_s19  ;;  %s1669_s19 = sand.u32 1, %s1440_s28  }
 0x111   : > { %s1147_s21 = sshll.u32 %s1669_s19, 4 }
 0x112   : > { %s1675_s22 = scalar_lea.vmem [#allocation9], %s1147_s21 }
 0x113   : > { %826 = vst.msk [vmem:[%s1675_s22] sm:$0xff] %vm731_vm4, %v849_v51 }
 0x114   : > { %769 = vrot.lane.b32.xlu1 %v1649_v31, %s1465_s24  ;;  %743 = vrot.lane.b32.xlu0 %v1649_v31, %s1869_s25 }
 0x118   : > { %795 = vrot.lane.b32.xlu0 %v1649_v31, %s1467_s26 }
 0x176   : > { %v763_v32 = vpop.permute.xlu1 %762  ;;  %v736_v33 = vpop.permute.xlu0 %735 }
 0x17a   : > { %v766_v39 = vpop.permute.xlu1 %765  ;;  %v739_v40 = vpop.permute.xlu0 %738 }
 0x17b   : > { %v768_v41 = vsel %vm725_vm3, %v763_v32, %v766_v39  ;;  %v741_v42 = vsel %vm725_vm3, %v736_v33, %v739_v40 }
 0x17c   : > { %v773_v43 = vmul.f32 %v768_v41, %v1658_v38  ;;  %v747_v44 = vmul.f32 %v741_v42, %v1658_v38 }
 0x17e   : > { %v792_v45 = vpop.permute.xlu1 %791  ;;  %775 = vrot.lane.b32.xlu0 %v773_v43, %s1465_s24  ;;  %749 = vrot.lane.b32.xlu1 %v747_v44, %s1869_s25  ;;  %v789_v46 = vpop.permute.xlu0 %788  ;;  %s1469_s24 = smov 120  }
 0x17f   : > { %v794_v47 = vsel %vm725_vm3, %v789_v46, %v792_v45 }
 0x180   : > { %v799_v48 = vmul.f32 %v794_v47, %v1658_v38 }
 0x182   : > { %v833_v49 = vpop.permute.xlu1 %832  ;;  %801 = vrot.lane.b32.xlu1 %v799_v48, %s1467_s26  ;;  %v830_v50 = vpop.permute.xlu0 %829  ;;  %s1146_s26 = sshll.u32 %s1669_s19, 5 }
 0x183   : > { %v835_v52 = vsel %vm725_vm3, %v830_v50, %v833_v49  ;;  %s1700_s16 = scalar_lea.vmem [#allocation5], %s1146_s26  ;;  %s1871_s26 = sshll.u32 %s1448_s30, 8 }
 0x184   : > { %v837_v53 = vmul.f32 %v835_v52, %v1658_v38  ;;  %s1723_s12 = scalar_lea.hbm %s1866_s7, %s1871_s26 }
 0x186   : > { %839 = vrot.lane.b32.xlu0 %v837_v53, %s1869_s25  ;;  %719 = vrot.lane.b32.xlu1 %v1632_v29, %s1463_s20  ;;  %v744_v54 = vpop.permute.xlu0 %743  ;;  %v770_v55 = vpop.permute.xlu1 %769  ;;  %s881_s25 = sshll.u32 %s1700_s16, 4  ;;  %s1757_s25 = int_to_ptr.vmem [resolvable:$true] %s881_s25 }
 0x187   : > { %v746_v56 = vmul.f32 %v1632_v29, %v744_v54  ;;  %v772_v1 = vmul.f32 %v770_v55, %v1632_v29  ;;  %v836_v2 = vmul.f32 %v1641_v30, %v744_v54 }
 0x18a   : > { %722 = vrot.lane.b32.xlu0 %v1632_v29, %s1468_s23  ;;  %814 = vrot.lane.b32.xlu1 %v1641_v30, %s1463_s20  ;;  %v796_v57 = vpop.permute.xlu0 %795  ;;  %s1470_s20 = smov 104  }
 0x18b   : > { %v798_v60 = vmul.f32 %v796_v57, %v1632_v29 }
 0x18e   : > { %817 = vrot.lane.b32.xlu0 %v1641_v30, %s1468_s23  ;;  %s422_s23 = scalar_lea.vmem [#allocation7], %s1147_s21 }
 0x1f0   : > { %v750_v58 = vpop.permute.xlu1 %749  ;;  %v776_v62 = vpop.permute.xlu0 %775 }
 0x1f1   : > { %v752_v59 = vadd.f32 %v750_v58, %v746_v56  ;;  %v778_v5 = vadd.f32 %v776_v62, %v772_v1 }
 0x1f3   : > { %v753_v61 = vmul.f32 0.5100697, %v752_v59  ;;  %v779_v9 = vmul.f32 0.5100697, %v778_v5 }
 0x1f4   : > { %v802_v63 = vpop.permute.xlu1 %801 }
 0x1f5   : > { %v804_v0 = vadd.f32 %v802_v63, %v798_v60  ;;  %755 = vrot.lane.b32.xlu0 %v753_v61, %s1469_s24 }
 0x1f7   : > { %v805_v3 = vmul.f32 0.5100697, %v804_v0 }
 0x1f8   : > { %v840_v4 = vpop.permute.xlu0 %839  ;;  %v720_v7 = vpop.permute.xlu1 %719 }
 0x1f9   : > { %v842_v6 = vadd.f32 %v840_v4, %v836_v2  ;;  %807 = vrot.lane.b32.xlu0 %v805_v3, %s1470_s20  ;;  %s898_s20 = sshll.u32 %s422_s23, 4  ;;  %s1714_s20 = int_to_ptr.vmem [resolvable:$true] %s898_s20 }
 0x1fa   : > { %s1318_s1 = scalar_lea.vmem %s1714_s20, 256  ;;  %p1325_p1 = scmp.lt.s32.totalorder %s1714_s20, %s1323_s3 }
 0x1fb   : > { %844 = vrot.lane.b32.xlu1 %v842_v6, %s1469_s24  ;;  %p1319_p12 = scmp.ne.s32.totalorder %s1714_s20, %s1318_s1  ;;  %p1326_p2 = scmp.lt.s32.totalorder %s1324_s4, %s1318_s1 }
 0x1fc   : > { %v723_v8 = vpop.permute.xlu0 %722  ;;  %v815_v14 = vpop.permute.xlu1 %814 }
 0x1fd   : > { %v726_v10 = vsel %vm725_vm3, %v720_v7, %v723_v8  ;;  %p1320_p13 = pnand %p1319_p12, %p1563_p4  ;;  %p1327_p3 = por %p1326_p2, %p1325_p1 }
 0x1fe   : > { %v728_v12 = vmul.f32 %v726_v10, %v1658_v38 }
 0x1ff   : > { %781 = vrot.lane.b32.xlu1 %v779_v9, %s1471_s14  ;;  %p1321_p0 = pneg %p1320_p13 }
 0x200   : > { %v729_v13 = vadd.f32 %v728_v12, %v727_v11  ;;  %v818_v15 = vpop.permute.xlu0 %817 }
 0x201   : > { %v820_v16 = vsel %vm725_vm3, %v815_v14, %v818_v15  ;;  %p1328_p5 = pnand %p1327_p3, %p1321_p0 }
 0x202   : > { %v730_v18 = vmul.f32 0.5100697, %v729_v13  ;;  %v822_v19 = vmul.f32 %v820_v16, %v1658_v38 }
 0x203   : > { %851 = vrot.lane.b32.xlu1 %v849_v51, %s1469_s24  ;;  %s1711_s24 = sand.u32 1, %s1136_s11   ;;  %s1169_s11 = sshll.u32 %s1448_s30, 9 }
 0x204   : > { %v823_v20 = vadd.f32 %v822_v19, %v821_v17  ;;  %732 = vst.msk [vmem:[%s1700_s16] sm:$0xff] %vm731_vm4, %v730_v18  ;;  %s1872_s0 = scalar_lea.sflag [#allocation8], %s1711_s24 }
 0x206   : > { %824 = vst.msk [vmem:[%s422_s23] sm:$0xff] %vm731_vm4, %v823_v20 }
 0x267   : > { %v756_v21 = vpop.permute.xlu0 %755 }
 0x268   : > { %1153 = vst.msk [vmem:[%s1700_s16 + $0x8] sm:$0xff] %vm731_vm4, %v756_v21 }
 0x26b   : > { %v808_v22 = vpop.permute.xlu0 %807 }
 0x26c   : > { %1155 = vst.msk [vmem:[%s1700_s16 + $0x18] sm:$0xff] %vm731_vm4, %v808_v22 }
 0x26d   : > { %v845_v23 = vpop.permute.xlu1 %844 }
 0x26e   : > { %1156 = vst.msk [vmem:[%s422_s23 + $0x8] sm:$0xff] %vm731_vm4, %v845_v23 }
 0x26f   : > { %1331 = shalt.err (!%p1328_p5)
}
 0x270   : > { %s1332_s23 = scalar_lea.hbm %s1723_s12, 256  ;;  %s1336_s2 = scalar_lea.hbm %s1866_s7, 512 }
 0x271   : > { %p1333_p6 = scmp.ne.s32.totalorder %s1723_s12, %s1332_s23  ;;  %p1337_p10 = scmp.lt.u32.totalorder %s1723_s12, %s1866_s7 }
 0x272   : > { %p1338_p11 = scmp.lt.u32.totalorder %s1336_s2, %s1332_s23  ;;  %p1340_p13 = scmp.lt.u32.totalorder %s1332_s23, %s1723_s12 }
 0x273   : > { %p1334_p7 = pnand %p1333_p6, %p1563_p4 }
 0x274   : > { %p1339_p12 = por %p1338_p11, %p1337_p10 }
 0x275   : > { %p1335_p9 = pneg %p1334_p7 }
 0x276   : > { %p1341_p0 = por %p1340_p13, %p1339_p12 }
 0x278   : > { %p1342_p1 = pnand %p1341_p0, %p1335_p9 }
 0x27a   : > { %1345 = shalt.err (!%p1342_p1)
}
 0x27b   : > { %s1473_s1 = smov 128   ;;  %s1885_s4 = smov 8   ;;  %v782_v24 = vpop.permute.xlu1 %781 }
 0x27c   : > { %1239 = dma.vmem_to_hbm [thread:$0]  (%p1563_p4), %s1714_s20, 256, %s1723_s12, %s1872_s0, %s1473_s1, %s1473_s1, %s1885_s4  }
 0x27d   : > { %s1764_s21 = scalar_lea.hbm %s1865_s6, %s1169_s11  ;;  %s915_s14 = sshll.u32 %s1675_s22, 4  ;;  %1154 = vst.msk [vmem:[%s1700_s16 + $0x10] sm:$0xff] %vm731_vm4, %v782_v24  ;;  %s1798_s14 = int_to_ptr.vmem [resolvable:$true] %s915_s14 }
 0x27e   : > { %s857_s2 = scalar_lea.sflag [#allocation6], %s1669_s19  ;;  %s1346_s3 = scalar_lea.vmem %s1757_s25, 512 }
 0x27f   : > { %p1347_p2 = scmp.ne.s32.totalorder %s1757_s25, %s1346_s3  ;;  %s1474_s12 = smov [#allocation5]  }
 0x280   : > { %s1350_s20 = sshll.u32 %s1474_s12, 4  ;;  %s1351_s20 = int_to_ptr.vmem [resolvable:$false] %s1350_s20 }
 0x281   : > { %p1348_p3 = pnand %p1347_p2, %p1563_p4  ;;  %s1352_s0 = scalar_lea.vmem %s1351_s20, 1024 }
 0x282   : > { %p1353_p6 = scmp.lt.s32.totalorder %s1757_s25, %s1351_s20  ;;  %p1354_p7 = scmp.lt.s32.totalorder %s1352_s0, %s1346_s3 }
 0x283   : > { %p1349_p5 = pneg %p1348_p3 }
 0x284   : > { %p1355_p9 = por %p1354_p7, %p1353_p6 }
 0x286   : > { %p1356_p10 = pnand %p1355_p9, %p1349_p5 }
 0x288   : > { %1359 = shalt.err (!%p1356_p10)
}
 0x289   : > { %s1360_s16 = scalar_lea.hbm %s1764_s21, 512  ;;  %s1364_s23 = scalar_lea.hbm %s1865_s6, 1024 }
 0x28a   : > { %p1361_p11 = scmp.ne.s32.totalorder %s1764_s21, %s1360_s16  ;;  %p1365_p0 = scmp.lt.u32.totalorder %s1764_s21, %s1865_s6 }
 0x28b   : > { %p1366_p1 = scmp.lt.u32.totalorder %s1364_s23, %s1360_s16  ;;  %p1368_p3 = scmp.lt.u32.totalorder %s1360_s16, %s1764_s21 }
 0x28c   : > { %p1362_p12 = pnand %p1361_p11, %p1563_p4 }
 0x28d   : > { %p1367_p2 = por %p1366_p1, %p1365_p0 }
 0x28e   : > { %p1363_p13 = pneg %p1362_p12 }
 0x28f   : > { %p1369_p5 = por %p1368_p3, %p1367_p2 }
 0x291   : > { %p1370_p6 = pnand %p1369_p5, %p1363_p13 }
 0x293   : > { %1373 = shalt.err (!%p1370_p6)
}
 0x294   : > { %1238 = dma.vmem_to_hbm [thread:$0]  (%p1563_p4), %s1757_s25, 512, %s1764_s21, %s857_s2, %s1473_s1, %s1473_s1, %s1885_s4   ;;  %v852_v25 = vpop.permute.xlu1 %851 }
 0x295   : > { %s1886_s0 = sshll.u32 %s1448_s30, 8  ;;  %1157 = vst.msk [vmem:[%s1675_s22 + $0x8] sm:$0xff] %vm731_vm4, %v852_v25  ;;  %s1374_s19 = scalar_lea.vmem %s1798_s14, 256 }
 0x296   : > { %s1805_s11 = scalar_lea.hbm %s1867_s8, %s1886_s0  ;;  %p1375_p7 = scmp.ne.s32.totalorder %s1798_s14, %s1374_s19 }
 0x297   : > { %s1475_s25 = smov [#allocation9]  }
 0x298   : > { %p1376_p9 = pnand %p1375_p7, %p1563_p4  ;;  %s1378_s21 = sshll.u32 %s1475_s25, 4  ;;  %s1379_s21 = int_to_ptr.vmem [resolvable:$false] %s1378_s21 }
 0x299   : > { %s1380_s30 = scalar_lea.vmem %s1379_s21, 512  ;;  %p1381_p11 = scmp.lt.s32.totalorder %s1798_s14, %s1379_s21 }
 0x29a   : > { %p1377_p10 = pneg %p1376_p9  ;;  %p1382_p12 = scmp.lt.s32.totalorder %s1380_s30, %s1374_s19 }
 0x29c   : > { %p1383_p13 = por %p1382_p12, %p1381_p11 }
 0x29e   : > { %p1384_p0 = pnand %p1383_p13, %p1377_p10 }
 0x2a0   : > { %1387 = shalt.err (!%p1384_p0)
}
 0x2a1   : > { %s1388_s22 = scalar_lea.hbm %s1805_s11, 256  ;;  %s1392_s23 = scalar_lea.hbm %s1867_s8, 512 }
 0x2a2   : > { %p1389_p1 = scmp.ne.s32.totalorder %s1805_s11, %s1388_s22  ;;  %p1393_p5 = scmp.lt.u32.totalorder %s1805_s11, %s1867_s8 }
 0x2a3   : > { %p1394_p6 = scmp.lt.u32.totalorder %s1392_s23, %s1388_s22  ;;  %p1396_p9 = scmp.lt.u32.totalorder %s1388_s22, %s1805_s11 }
 0x2a4   : > { %p1390_p2 = pnand %p1389_p1, %p1563_p4 }
 0x2a5   : > { %p1395_p7 = por %p1394_p6, %p1393_p5 }
 0x2a6   : > { %p1391_p3 = pneg %p1390_p2 }
 0x2a7   : > { %p1397_p10 = por %p1396_p9, %p1395_p7 }
 0x2a9   : > { %p1398_p11 = pnand %p1397_p10, %p1391_p3 }
 0x2ab   : > { %1401 = shalt.err (!%p1398_p11)
}
 0x2ac   : > { %s1887_s0 = scalar_lea.sflag [#allocation8], %s1711_s24 }
 0x2ad   : > { %1240 = dma.vmem_to_hbm [thread:$0]  (%p1563_p4), %s1798_s14, 256, %s1805_s11, %s1887_s0, %s1473_s1, %s1473_s1, %s1885_s4  }
 0x2ae PF: > { %p1254_p12 = scmp.ge.s32.totalorder %s1456_s10, 2  ;;  %s930_s3 = sand.u32 1, %s1436_s27  }
 0x2af   : > { %s931_s16 = scalar_lea.sflag [#allocation6], %s930_s3 }
 0x2b0   : > { %p1245_p13 = pnand %p1254_p12, %p1572_p8 }
 0x2b2   : > { %1427 = dma.done.wait (!%p1245_p13), %s931_s16, 512  }
 0x2b3   : > { %1429 = vsyncadd (!%p1245_p13), %s931_s16, 4294966784  ;;  %s1888_s15 = sadd.s32 4294967294, %s1456_s10  }
 0x2b4   : > { %s939_s19 = sand.u32 1, %s1888_s15  }
 0x2b5   : > { %s940_s25 = scalar_lea.sflag [#allocation8], %s939_s19 }
 0x2b6   : > { %1431 = dma.done.wait (!%p1245_p13), %s940_s25, 512  }
 0x2b7   : > { %1433 = vsyncadd (!%p1245_p13), %s940_s25, 4294966784  ;;  %s25_s10 = sadd.s32 1, %s1456_s10   ;;  %s1889_s27 = smov %s1440_s28 }
 0x2b8   : > { %p22_p4 = scmp.ge.s32.totalorder %s25_s10, 4   ;;  %s1890_s28 = smov %s1444_s29 }
 0x2b9   : > { %s1891_s29 = smov %s1578_s18  ;;  %s1892_s30 = smov %s1452_s9 }
 0x2ba   : > { %s1893_s9 = smov %s1895_s13  ;;  %24 = sbr.rel (!%p22_p4) target bundleno = 12 (0xc), region = 139 }
 0x2c1   :  { %954 = vsyncpa [#allocation6], 1 }
 0x2c2   :  { %956 = vsyncpa [#allocation6 + $0x1], 1 }
 0x2c3   :  { %957 = vsyncpa [#allocation8], 1 }
 0x2c4   :  { %959 = vsyncpa [#allocation8 + $0x1], 1 }

</bundles_post_ra>
